<compile_context>
chip_gen: v6e
topology: v6e:2x2x1
jax: 0.10.0
libtpu: 0.0.40
codegen_flags: <defaults>
</compile_context>

<pallas_src>
import jax
import jax.numpy as jnp
from jax.experimental import pallas as pl
from jax.experimental.pallas import tpu as pltpu


BN_EPS = 1e-5


def _sensitivity_kernel(x_ref, w1_ref, b1_ref, w2_ref, b2_ref, o_ref):
    # Layer 1 (Linear with BN folded in): (TB, D) @ (D, H) on the MXU, f32 acc.
    h = jnp.dot(x_ref[...], w1_ref[...], preferred_element_type=jnp.float32)
    h = h + b1_ref[...]                       # (TB, H) + (1, H) broadcast
    h = jnp.maximum(h, 0.0)                   # ReLU
    # Dropout -> identity in eval mode.
    # Layer 2 (Linear H -> 1): VPU multiply + XLU lane reduction.
    out = jnp.sum(h * w2_ref[...], axis=-1, keepdims=True)   # (TB, 1)
    o_ref[...] = (out + b2_ref[0]).astype(o_ref.dtype)


def _choose_tile_rows(B, D, itemsize, target_tile_bytes=2 * 1024 * 1024):
    """~2 MiB x-tiles to amortize per-grid-step overhead; whole batch in one
    block when it already fits comfortably (still tiny vs. VMEM)."""
    tb = max(512, target_tile_bytes // (D * itemsize))
    tb = (tb // 8) * 8
    if tb >= B:
        return B                              # single block == full batch dim
    # Keep >= 4 tiles so v7x's two TensorCores both get work and the pipeline fills.
    while tb >= 1024 and pl.cdiv(B, tb) < 4:
        tb //= 2
    return max((tb // 8) * 8, 8)


def sensitivity_forward(x, params, *, tile_rows=None, use_bf16=False):
    """x: (B, input_dim). Returns (B, 1) float32 (eval-mode forward)."""
    B, D = x.shape
    H = params["w1"].shape[1]

    # ---- Fold BatchNorm1d (inference) into the first Linear (wrapper-side).
    scale = params["gamma"] * jax.lax.rsqrt(params["var"] + BN_EPS)          # (1, H)
    w1_f = params["w1"] * scale                                              # (D, H)
    b1_f = ((params["b1"] - params["mean"]) * scale + params["beta"]).astype(jnp.float32)
    w2_row = params["w2"].reshape(1, H).astype(jnp.float32)                  # (1, H)
    b2 = params["b2"].reshape(1).astype(jnp.float32)                         # (1,) SMEM

    if use_bf16:
        # Halves the HBM traffic that bounds this kernel; MXU accumulates in f32.
        x = x.astype(jnp.bfloat16)
        w1_f = w1_f.astype(jnp.bfloat16)
    else:
        x = x.astype(jnp.float32)
        w1_f = w1_f.astype(jnp.float32)

    itemsize = jnp.dtype(x.dtype).itemsize
    TB = tile_rows if tile_rows is not None else _choose_tile_rows(B, D, itemsize)
    n_tiles = pl.cdiv(B, TB)                  # ragged last tile handled by Pallas

    out = pl.pallas_call(
        _sensitivity_kernel,
        out_shape=jax.ShapeDtypeStruct((B, 1), jnp.float32),
        grid=(n_tiles,),
        in_specs=[
            pl.BlockSpec((TB, D), lambda i: (i, 0)),            # x: pipelined tiles
            pl.BlockSpec((D, H), lambda i: (0, 0)),             # w1' (VMEM-resident)
            pl.BlockSpec((1, H), lambda i: (0, 0)),             # b1' (VMEM-resident)
            pl.BlockSpec((1, H), lambda i: (0, 0)),             # w2 row (VMEM-resident)
            pl.BlockSpec(memory_space=pltpu.MemorySpace.SMEM),  # b2 scalar
        ],
        out_specs=pl.BlockSpec((TB, 1), lambda i: (i, 0)),
        compiler_params=pltpu.CompilerParams(
            dimension_semantics=("parallel",),
            vmem_limit_bytes=32 * 1024 * 1024,
        ),
        cost_estimate=pl.CostEstimate(
            flops=2 * B * D * H + 2 * B * H,
            transcendentals=0,
            bytes_accessed=(B * D + D * H) * itemsize + 4 * (2 * H + 1 + B),
        ),
    )(x, w1_f, b1_f, w2_row, b2)

    return out


def init_params(key, input_dim, hidden):
    """Deterministic synthetic parameters (shapes from SensitivityModel.__init__)."""
    ks = jax.random.split(key, 6)
    # Linear 1: torch weight (H, input_dim); stored transposed as (input_dim, H).
    lim1 = 1.0 / jnp.sqrt(input_dim)
    w1 = jax.random.uniform(ks[0], (input_dim, hidden), jnp.float32, -lim1, lim1)
    b1 = jax.random.uniform(ks[1], (1, hidden), jnp.float32, -lim1, lim1)
    # BatchNorm1d(H): gamma=1, beta=0 default; non-trivial running stats.
    gamma = jnp.ones((1, hidden), jnp.float32)
    beta = jnp.zeros((1, hidden), jnp.float32)
    mean = 0.1 * jax.random.normal(ks[2], (1, hidden), jnp.float32)
    var = jnp.abs(jax.random.normal(ks[3], (1, hidden), jnp.float32)) + 0.5
    # Linear 2: torch weight (1, H); stored transposed as (H, 1).
    lim2 = 1.0 / jnp.sqrt(hidden)
    w2 = jax.random.uniform(ks[4], (hidden, 1), jnp.float32, -lim2, lim2)
    b2 = jax.random.uniform(ks[5], (1, 1), jnp.float32, -lim2, lim2)
    return dict(w1=w1, b1=b1, gamma=gamma, beta=beta, mean=mean, var=var,
                w2=w2, b2=b2)


def reference_forward(x, p):
    """Pure-JAX reference with un-folded BN math (matches the torch module, eval)."""
    h = x @ p["w1"] + p["b1"]
    h = (h - p["mean"]) * jax.lax.rsqrt(p["var"] + BN_EPS) * p["gamma"] + p["beta"]
    h = jnp.maximum(h, 0.0)
    return h @ p["w2"] + p["b2"]


if __name__ == "__main__":
    INPUT_DIM, HIDDEN = 32, 32   # mlp_dims[-1] == 32

    key = jax.random.PRNGKey(0)
    k_x, k_x2, k_p = jax.random.split(key, 3)
    params = init_params(k_p, INPUT_DIM, HIDDEN)

    # 1) Small batch -> single full-batch block.
    x = jax.random.normal(k_x, (8, INPUT_DIM), jnp.float32)
    out = sensitivity_forward(x, params)
    jax.block_until_ready(out)
    ref = reference_forward(x, params)
    assert out.shape == (8, 1)
    assert jnp.allclose(out, ref, atol=1e-4, rtol=1e-4), \
        float(jnp.max(jnp.abs(out - ref)))

    # 2) Ragged multi-tile grid (B=20, TB=8 -> 3 tiles, partial last tile, no pad/copy).
    x2 = jax.random.normal(k_x2, (20, INPUT_DIM), jnp.float32)
    out2 = sensitivity_forward(x2, params, tile_rows=8)
    jax.block_until_ready(out2)
    ref2 = reference_forward(x2, params)
    assert out2.shape == (20, 1)
    assert jnp.allclose(out2, ref2, atol=1e-4, rtol=1e-4), \
        float(jnp.max(jnp.abs(out2 - ref2)))

    # 3) Optional bf16-input path (f32 accumulation) -> looser tolerance.
    out3 = sensitivity_forward(x, params, use_bf16=True)
    jax.block_until_ready(out3)
    assert jnp.allclose(out3, ref, atol=5e-2, rtol=5e-2), \
        float(jnp.max(jnp.abs(out3 - ref)))

    print("KERNEL_OK")
</pallas_src>

<mosaic_0001>
module attributes {stable_mosaic.version = 11 : i64} {
  func.func @_sensitivity_kernel(%arg0: i32, %arg1: memref<8x32xf32, #tpu.memory_space<vmem>>, %arg2: memref<32x32xf32, #tpu.memory_space<vmem>>, %arg3: memref<1x32xf32, #tpu.memory_space<vmem>>, %arg4: memref<1x32xf32, #tpu.memory_space<vmem>>, %arg5: memref<1xf32, #tpu.memory_space<smem>>, %arg6: memref<8x1xf32, #tpu.memory_space<vmem>>) attributes {dimension_semantics = [#tpu.dimension_semantics<parallel>], iteration_bounds = array<i64: 1>, scalar_prefetch = 0 : i64, scratch_operands = 0 : i64, tpu.core_type = #tpu.core_type<tc>, window_params = [{transform_indices = @transform_0, window_bounds = array<i64: 8, 32>}, {pipeline_mode = #tpu.pipeline_mode<synchronous>, transform_indices = @transform_1, window_bounds = array<i64: 32, 32>}, {pipeline_mode = #tpu.pipeline_mode<synchronous>, transform_indices = @transform_2, window_bounds = array<i64: 1, 32>}, {pipeline_mode = #tpu.pipeline_mode<synchronous>, transform_indices = @transform_3, window_bounds = array<i64: 1, 32>}, {transform_indices = @transform_4, window_bounds = array<i64: 1>}, {transform_indices = @transform_5, window_bounds = array<i64: 8, 1>}]} {
    %c0 = arith.constant 0 : index
    %c0_0 = arith.constant 0 : index
    %0 = vector.load %arg1[%c0, %c0_0] : memref<8x32xf32, #tpu.memory_space<vmem>>, vector<8x32xf32>
    %c0_1 = arith.constant 0 : index
    %c0_2 = arith.constant 0 : index
    %1 = vector.load %arg2[%c0_1, %c0_2] : memref<32x32xf32, #tpu.memory_space<vmem>>, vector<32x32xf32>
    %cst = arith.constant dense<0.000000e+00> : vector<8x32xf32>
    %2 = tpu.matmul %0, %1, %cst {dimension_numbers = #tpu.dot_dimension_numbers<[1], [0], [0], [1], [0, 0, 1, 1], [], []>} : vector<8x32xf32>, vector<32x32xf32>, vector<8x32xf32> -> vector<8x32xf32>
    %c0_3 = arith.constant 0 : index
    %c0_4 = arith.constant 0 : index
    %3 = vector.load %arg3[%c0_3, %c0_4] : memref<1x32xf32, #tpu.memory_space<vmem>>, vector<1x32xf32>
    %4 = vector.broadcast %3 : vector<1x32xf32> to vector<8x32xf32>
    %5 = arith.addf %2, %4 : vector<8x32xf32>
    %cst_5 = arith.constant 0.000000e+00 : f32
    %6 = vector.broadcast %cst_5 : f32 to vector<8x32xf32>
    %7 = arith.maximumf %5, %6 : vector<8x32xf32>
    %c0_6 = arith.constant 0 : index
    %c0_7 = arith.constant 0 : index
    %8 = vector.load %arg4[%c0_6, %c0_7] : memref<1x32xf32, #tpu.memory_space<vmem>>, vector<1x32xf32>
    %9 = vector.broadcast %8 : vector<1x32xf32> to vector<8x32xf32>
    %10 = arith.mulf %7, %9 : vector<8x32xf32>
    %cst_8 = arith.constant dense<0.000000e+00> : vector<8xf32>
    %11 = vector.multi_reduction <add>, %10, %cst_8 [1] : vector<8x32xf32> to vector<8xf32>
    %12 = vector.shape_cast %11 : vector<8xf32> to vector<8x1xf32>
    %c0_9 = arith.constant 0 : index
    %13 = memref.load %arg5[%c0_9] : memref<1xf32, #tpu.memory_space<smem>>
    %14 = vector.broadcast %13 : f32 to vector<8x1xf32>
    %15 = arith.addf %12, %14 : vector<8x1xf32>
    %c0_10 = arith.constant 0 : index
    %c0_11 = arith.constant 0 : index
    %16 = vector.load %arg6[%c0_10, %c0_11] : memref<8x1xf32, #tpu.memory_space<vmem>>, vector<8x1xf32>
    tpu.vector_store %arg6[%c0_10, %c0_11], %15 {strides = array<i32>} : memref<8x1xf32, #tpu.memory_space<vmem>>, vector<8x1xf32>,
    return
  }
  func.func @transform_0(%arg0: i32) -> (i32, i32) {
    %c0_i32 = arith.constant 0 : i32
    %c0_i32_0 = arith.constant 0 : i32
    return %arg0, %c0_i32 : i32, i32
  }
  func.func @transform_1(%arg0: i32) -> (i32, i32) {
    %c0_i32 = arith.constant 0 : i32
    %c0_i32_0 = arith.constant 0 : i32
    %c0_i32_1 = arith.constant 0 : i32
    return %c0_i32, %c0_i32_0 : i32, i32
  }
  func.func @transform_2(%arg0: i32) -> (i32, i32) {
    %c0_i32 = arith.constant 0 : i32
    %c0_i32_0 = arith.constant 0 : i32
    %c0_i32_1 = arith.constant 0 : i32
    return %c0_i32, %c0_i32_0 : i32, i32
  }
  func.func @transform_3(%arg0: i32) -> (i32, i32) {
    %c0_i32 = arith.constant 0 : i32
    %c0_i32_0 = arith.constant 0 : i32
    %c0_i32_1 = arith.constant 0 : i32
    return %c0_i32, %c0_i32_0 : i32, i32
  }
  func.func @transform_4(%arg0: i32) -> i32 {
    %c0_i32 = arith.constant 0 : i32
    %c0_i32_0 = arith.constant 0 : i32
    return %c0_i32 : i32
  }
  func.func @transform_5(%arg0: i32) -> (i32, i32) {
    %c0_i32 = arith.constant 0 : i32
    %c0_i32_0 = arith.constant 0 : i32
    return %arg0, %c0_i32 : i32, i32
  }
}

</mosaic_0001>

<bundles_post_ra>
// kernel: tpu_custom_call.1
= control target key start
LH: loop header
LB: loop body
LE: loop exit
PB: predicated region body
PF: predicated region fallthrough
CT: control target
= control target key end

     0   :  { %11 = vsyncpa [#allocation4], 0  ;;  %s279_s0 = inlined_call_operand.hbm [shape: f32[8,32], index: 0, kind: input, shape index: {}]   ;;  %s280_s1 = inlined_call_operand.hbm [shape: f32[32,32], index: 1, kind: input, shape index: {}]   ;;  %s281_s2 = inlined_call_operand.vmem [shape: f32[1,32], index: 2, kind: input, shape index: {}]   ;;  %s282_s3 = inlined_call_operand.vmem [shape: f32[1,32], index: 3, kind: input, shape index: {}]   ;;  %s283_s4 = inlined_call_operand.<no memory space> [shape: f32[1], index: 4, kind: input, shape index: {}]   ;;  %s284_s5 = inlined_call_operand.vmem [shape: f32[8,1], index: 5, kind: output, shape index: {}]  }
   0x1   :  { %12 = vsyncpa [#allocation6], 0  ;;  %s225_s18 = smov [#allocation3]   ;;  %s226_s20 = smov [#allocation5]  }
   0x2   :  { %s19_s19 = sshll.u32 %s225_s18, 4  ;;  %s28_s21 = sshll.u32 %s226_s20, 4  ;;  %s20_s19 = int_to_ptr.vmem [resolvable:$true] %s19_s19  ;;  %s29_s21 = int_to_ptr.vmem [resolvable:$true] %s28_s21 }
   0x3   :  { %s189_s22 = scalar_lea.vmem %s20_s19, 128  ;;  %p194_p1 = scmp.lt.s32.totalorder %s20_s19, %s20_s19 }
   0x4   :  { %p190_p0 = scmp.ne.s32.totalorder %s20_s19, %s189_s22  ;;  %p195_p2 = scmp.lt.s32.totalorder %s189_s22, %s189_s22 }
   0x6   :  { %p196_p3 = por %p195_p2, %p194_p1 }
   0x8   :  { %p197_p4 = pnand %p196_p3, %p190_p0 }
   0xa   :  { %200 = shalt.err (!%p197_p4)
}
   0xb   :  { %22 = dma.hbm_to_vmem [thread:$0]  %s279_s0, 128, %s20_s19, [#allocation4]  }
   0xc   :  { %s209_s25 = scalar_lea.vmem %s29_s21, 512  ;;  %p214_p6 = scmp.lt.s32.totalorder %s29_s21, %s29_s21 }
   0xd   :  { %p210_p5 = scmp.ne.s32.totalorder %s29_s21, %s209_s25  ;;  %p215_p7 = scmp.lt.s32.totalorder %s209_s25, %s209_s25 }
   0xf   :  { %p216_p8 = por %p215_p7, %p214_p6 }
  0x11   :  { %p217_p9 = pnand %p216_p8, %p210_p5 }
  0x13   :  { %220 = shalt.err (!%p217_p9)
}
  0x14   :  { %s227_s26 = smov 128   ;;  %s228_s27 = smov 8  }
  0x15   :  { %34 = dma.hbm_to_vmem [thread:$0]  %s280_s1, 512, %s29_s21, [#allocation6], %s227_s26, %s227_s26, %s228_s27  }
  0x16   :  { %221 = dma.done.wait [#allocation4], 128  }
  0x17   :  { %222 = vsyncadd [#allocation4], 4294967168 }
  0x18   :  { %223 = dma.done.wait [#allocation6], 512  }
  0x19   :  { %224 = vsyncadd [#allocation6], 4294966784  ;;  %v229_v0 = vmov 0.0   ;;  %vm230_vm0 = vmmov 0   ;;  %v51_v1 = vld [vmem:[#allocation5 + $0x18] sm:$0xff]  ;;  %v50_v2 = vld [vmem:[#allocation5 + $0x10] sm:$0xff]  ;;  %v146_v14 = vstv %s283_s4 }
  0x1a   :  { %164 = vmatprep.subr.mxu0 %v229_v0  ;;  %172 = vmatprep.mubr.msk.f32.mxu0 %vm230_vm0, %v229_v0  ;;  %v49_v3 = vld [vmem:[#allocation5 + $0x8] sm:$0xff]  ;;  %v48_v4 = vld [vmem:[#allocation5] sm:$0xff]  ;;  %v47_v5 = vld [vmem:[#allocation3] sm:$0xff]  ;;  %vm59_vm1 = vcmask 261120   ;;  %vm148_vm2 = vcmask 7168  }
  0x1b   :  { %165 = vmatpush3.msra.mxu0 %v51_v1  ;;  %v156_v6 = vld [vmem:[%s281_s2] ss:$0 sm:$0xff] }
  0x1c   :  { %166 = vmatprep.subr.mxu0 %v229_v0  ;;  %v158_v10 = vld [vmem:[%s282_s3] ss:$0 sm:$0xff] }
  0x1d   :  { %167 = vmatpush3.msra.mxu0 %v50_v2 }
  0x1e   :  { %168 = vmatprep.subr.mxu0 %v229_v0 }
  0x1f   :  { %169 = vmatpush3.msra.mxu0 %v49_v3 }
  0x20   :  { %170 = vmatprep.subr.mxu0 %v229_v0 }
  0x21   :  { %171 = vmatpush3.msra.mxu0 %v48_v4 }
  0x22   :  { %173 = vmatmul.mubr.msk.f32.vlgmr.msra.gmra.mxu0 %vm59_vm1, %v47_v5 }
  0xe2   :  { %v129_v7 = vpop.f32.mrf.mxu0 }
  0xe3   :  { %v130_v8 = vadd.f32 %v156_v6, %v129_v7 }
  0xe4   :  { %v174_v9 = vpop.f32.mrf.mxu0 }
  0xe5   :  { %v133_v11 = vmax.f32 %v130_v8, 0.0 }
  0xe7   :  { %v141_v12 = vmul.f32 %v158_v10, %v133_v11 }
  0xe9   :  { %v142_v13 = vsel %vm59_vm1, %v141_v12, 0.0 }
  0xea   :  { %143 = vadd.xlane.f32.xlu0 %v142_v13 }
 0x173   :  { %v144_v15 = vpop.xlane.xlu0 %143 }
 0x174   :  { %v147_v16 = vadd.f32 %v146_v14, %v144_v15 }
 0x176   :  { %149 = vst.msk [vmem:[%s284_s5] sm:$0xff] %vm148_vm2, %v147_v16 }
 0x177   :  { %154 = vsyncpa [#allocation4], 1 }
 0x178   :  { %155 = vsyncpa [#allocation6], 1 }

</bundles_post_ra>
